<compile_context>
chip_gen: v7x
topology: tpu7x:2x2x1
jax: 0.10.0
libtpu: 0.0.40
codegen_flags: <defaults>
</compile_context>

<pallas_src>
import jax
import jax.numpy as jnp
from jax.experimental import pallas as pl
from jax.experimental.pallas import tpu as pltpu

H = 768          # RoBERTa hidden size (fc: 768 -> dim)
DIM = 256        # args.dim
N_CLASSES = 3    # n_classes
PAD_OUT = 128    # lane-dense padded classifier width
LN_EPS = 1e-5    # torch.nn.LayerNorm default
TB_CAP = 1024    # max rows per grid step (see perf review)


def head_kernel(hs_ref, wfc_ref, vec_ref, wcls_ref, out_ref):
    # hs_ref: (TB, H) -- the CLS rows, gathered directly by the BlockSpec.
    # vec_ref: (8, DIM) f32 packed small vectors:
    #   row 0 = fc bias, row 1 = LN gamma, row 2 = LN beta,
    #   row 3 = classifier bias in lanes [0:PAD_OUT], rows 4..7 = padding.
    x = hs_ref[...].astype(jnp.bfloat16)

    # fc: 768 -> DIM (bf16 weights, f32 accumulation on the MXU)
    h = jnp.dot(x, wfc_ref[...], preferred_element_type=jnp.float32)
    h = h + vec_ref[0:1, :]                       # fc bias

    # LayerNorm(DIM) in f32 (args.ln == 1)
    mu = jnp.mean(h, axis=-1, keepdims=True)
    var = jnp.mean((h - mu) * (h - mu), axis=-1, keepdims=True)
    h = (h - mu) * jax.lax.rsqrt(var + LN_EPS) * vec_ref[1:2, :] + vec_ref[2:3, :]

    # ReLU
    h = jnp.maximum(h, 0.0)
    # TODO(synk): dropout omitted (inference / eval-mode semantics -> identity).

    # classifier: DIM -> 128 (zero-padded from 3 classes for lane-dense stores)
    logits = jnp.dot(h.astype(jnp.bfloat16), wcls_ref[...],
                     preferred_element_type=jnp.float32)
    logits = logits + vec_ref[3:4, :PAD_OUT]      # classifier bias (packed row 3)
    out_ref[...] = logits.astype(out_ref.dtype)   # bf16 lane-dense store


def _pick_tb(B, cap=TB_CAP):
    """Batch tile: multiple of 8 where possible; even step count above cap."""
    if B <= 8:
        return B
    if B <= cap:
        return (B // 8) * 8                       # last block ragged if B % 8
    steps = -(-B // cap)
    if steps % 2:                                 # even split across v7x's 2 TCs
        steps += 1
    return ((-(-B // steps)) + 7) // 8 * 8


@jax.jit
def sentiment_head(hidden_state, kp):
    """hidden_state: (B, S, H) f32 or bf16; kp: kernel-layout params.

    Returns (B, N_CLASSES) bf16 logits.
    """
    B, S, Hdim = hidden_state.shape
    # Free reshape (bitcast for the default row-major layout): row b of hs2d is
    # [hs[b,0,:], hs[b,1,:], ...]; the input BlockSpec below grabs only columns
    # [0:H] of each row == the CLS token, so just the CLS rows are DMA'd.
    hs2d = hidden_state.reshape(B, S * Hdim)

    TB = _pick_tb(B)
    grid = (pl.cdiv(B, TB),)

    out = pl.pallas_call(
        head_kernel,
        out_shape=jax.ShapeDtypeStruct((B, PAD_OUT), jnp.bfloat16),
        grid=grid,
        in_specs=[
            pl.BlockSpec((TB, Hdim), lambda i: (i, 0)),       # CLS rows only
            pl.BlockSpec((Hdim, DIM), lambda i: (0, 0)),      # fc weight (resident)
            pl.BlockSpec((8, DIM), lambda i: (0, 0)),         # packed bias/gamma/beta/b_cls
            pl.BlockSpec((DIM, PAD_OUT), lambda i: (0, 0)),   # classifier weight
        ],
        out_specs=pl.BlockSpec((TB, PAD_OUT), lambda i: (i, 0)),
        compiler_params=pltpu.CompilerParams(
            dimension_semantics=("parallel",),
            vmem_limit_bytes=32 << 20),
    )(hs2d, kp["w_fc"], kp["vec"], kp["w_cls"])

    return out[:, :N_CLASSES]


# ---------------------------------------------------------------------------
# Parameter construction (PyTorch layout) and one-time kernel-layout prep.
# ---------------------------------------------------------------------------
def _linear_init(key, out_f, in_f):
    # Mimic torch.nn.Linear default init: U(-1/sqrt(in), 1/sqrt(in))
    kw, kb = jax.random.split(key)
    bound = 1.0 / jnp.sqrt(in_f)
    w = jax.random.uniform(kw, (out_f, in_f), jnp.float32, -bound, bound)
    b = jax.random.uniform(kb, (out_f,), jnp.float32, -bound, bound)
    return w, b


def make_params(key):
    k1, k2 = jax.random.split(key)
    fc_w, fc_b = _linear_init(k1, DIM, H)             # (256, 768), (256,)
    cls_w, cls_b = _linear_init(k2, N_CLASSES, DIM)   # (3, 256), (3,)
    return dict(
        fc_w=fc_w, fc_b=fc_b,
        cls_w=cls_w, cls_b=cls_b,
        ln_g=jnp.ones((DIM,), jnp.float32), ln_b=jnp.zeros((DIM,), jnp.float32),
    )


def prepare_kernel_params(p):
    """One-time (outside jit): transpose to (in, out), cast to bf16, pad, pack."""
    w_fc = jnp.asarray(p["fc_w"].T, dtype=jnp.bfloat16)                   # (768, 256)
    w_cls = jnp.zeros((DIM, PAD_OUT), jnp.bfloat16)
    w_cls = w_cls.at[:, :N_CLASSES].set(p["cls_w"].T.astype(jnp.bfloat16))
    # Packed (8, 256) f32 tile: fc bias / LN gamma / LN beta / padded cls bias.
    vec = jnp.zeros((8, DIM), jnp.float32)
    vec = vec.at[0].set(p["fc_b"])
    vec = vec.at[1].set(p["ln_g"])
    vec = vec.at[2].set(p["ln_b"])
    vec = vec.at[3, :N_CLASSES].set(p["cls_b"])
    return dict(w_fc=w_fc, vec=vec, w_cls=w_cls)


def reference_head(hidden_state, p):
    """Pure-JAX f32 reference matching the PyTorch forward (eval mode)."""
    x = hidden_state[:, 0, :]
    h = x @ p["fc_w"].T + p["fc_b"]
    mu = h.mean(-1, keepdims=True)
    var = ((h - mu) ** 2).mean(-1, keepdims=True)
    h = (h - mu) / jnp.sqrt(var + LN_EPS) * p["ln_g"] + p["ln_b"]
    h = jnp.maximum(h, 0.0)
    return h @ p["cls_w"].T + p["cls_b"]


if __name__ == "__main__":
    key = jax.random.PRNGKey(0)
    k_hs, k_params = jax.random.split(key)

    params = make_params(k_params)
    kparams = prepare_kernel_params(params)   # kernel layout, built once

    S = 8
    # Main small-shape run (B=2) plus ragged-batch checks (B=7: B < 8;
    # B=12: TB=8 with a partial last block) per the correctness review.
    for B in (2, 7, 12):
        hidden_state = jax.random.normal(jax.random.fold_in(k_hs, B),
                                         (B, S, H), jnp.float32)
        logits = sentiment_head(hidden_state, kparams)
        jax.block_until_ready(logits)
        ref = reference_head(hidden_state, params)
        assert logits.shape == (B, N_CLASSES)
        err = jnp.max(jnp.abs(logits.astype(jnp.float32) - ref))
        # bf16 weights + bf16 output store -> relaxed tolerance vs f32 reference.
        assert err < 3e-2, f"B={B}: max diff {err}"

    # bf16 backbone-output path (halves the dominant CLS-row DMA stream).
    hs_bf16 = jax.random.normal(k_hs, (2, S, H), jnp.float32).astype(jnp.bfloat16)
    logits = sentiment_head(hs_bf16, kparams)
    jax.block_until_ready(logits)
    ref = reference_head(hs_bf16.astype(jnp.float32), params)
    err = jnp.max(jnp.abs(logits.astype(jnp.float32) - ref))
    assert err < 6e-2, f"bf16 input: max diff {err}"

    print("KERNEL_OK")
</pallas_src>

<mosaic_0001>
module attributes {stable_mosaic.version = 11 : i64} {
  func.func @head_kernel(%arg0: i32, %arg1: memref<2x768xf32, #tpu.memory_space<vmem>>, %arg2: memref<768x256xbf16, #tpu.memory_space<vmem>>, %arg3: memref<8x256xf32, #tpu.memory_space<vmem>>, %arg4: memref<256x128xbf16, #tpu.memory_space<vmem>>, %arg5: memref<2x128xbf16, #tpu.memory_space<vmem>>) attributes {dimension_semantics = [#tpu.dimension_semantics<parallel>], iteration_bounds = array<i64: 1>, scalar_prefetch = 0 : i64, scratch_operands = 0 : i64, tpu.core_type = #tpu.core_type<tc>, window_params = [{transform_indices = @transform_0, window_bounds = array<i64: 2, 768>}, {pipeline_mode = #tpu.pipeline_mode<synchronous>, transform_indices = @transform_1, window_bounds = array<i64: 768, 256>}, {pipeline_mode = #tpu.pipeline_mode<synchronous>, transform_indices = @transform_2, window_bounds = array<i64: 8, 256>}, {pipeline_mode = #tpu.pipeline_mode<synchronous>, transform_indices = @transform_3, window_bounds = array<i64: 256, 128>}, {transform_indices = @transform_4, window_bounds = array<i64: 2, 128>}]} {
    %c0 = arith.constant 0 : index
    %c0_0 = arith.constant 0 : index
    %0 = vector.load %arg1[%c0, %c0_0] : memref<2x768xf32, #tpu.memory_space<vmem>>, vector<2x768xf32>
    %1 = arith.truncf %0 : vector<2x768xf32> to vector<2x768xbf16>
    %c0_1 = arith.constant 0 : index
    %c0_2 = arith.constant 0 : index
    %2 = vector.load %arg2[%c0_1, %c0_2] : memref<768x256xbf16, #tpu.memory_space<vmem>>, vector<768x256xbf16>
    %cst = arith.constant dense<0.000000e+00> : vector<2x256xf32>
    %3 = tpu.matmul %1, %2, %cst {dimension_numbers = #tpu.dot_dimension_numbers<[1], [0], [0], [1], [0, 0, 1, 1], [], []>} : vector<2x768xbf16>, vector<768x256xbf16>, vector<2x256xf32> -> vector<2x256xf32>
    %c0_3 = arith.constant 0 : index
    %c0_4 = arith.constant 0 : index
    %4 = vector.load %arg3[%c0_3, %c0_4] : memref<8x256xf32, #tpu.memory_space<vmem>>, vector<1x256xf32>
    %5 = vector.broadcast %4 : vector<1x256xf32> to vector<2x256xf32>
    %6 = arith.addf %3, %5 : vector<2x256xf32>
    %cst_5 = arith.constant dense<0.000000e+00> : vector<2xf32>
    %7 = vector.multi_reduction <add>, %6, %cst_5 [1] : vector<2x256xf32> to vector<2xf32>
    %8 = vector.shape_cast %7 : vector<2xf32> to vector<2x1xf32>
    %cst_6 = arith.constant 2.560000e+02 : f32
    %9 = vector.broadcast %cst_6 : f32 to vector<2x1xf32>
    %10 = arith.divf %8, %9 : vector<2x1xf32>
    %11 = vector.broadcast %10 : vector<2x1xf32> to vector<2x256xf32>
    %12 = arith.subf %6, %11 : vector<2x256xf32>
    %13 = vector.broadcast %10 : vector<2x1xf32> to vector<2x256xf32>
    %14 = arith.subf %6, %13 : vector<2x256xf32>
    %15 = arith.mulf %12, %14 : vector<2x256xf32>
    %cst_7 = arith.constant dense<0.000000e+00> : vector<2xf32>
    %16 = vector.multi_reduction <add>, %15, %cst_7 [1] : vector<2x256xf32> to vector<2xf32>
    %17 = vector.shape_cast %16 : vector<2xf32> to vector<2x1xf32>
    %cst_8 = arith.constant 2.560000e+02 : f32
    %18 = vector.broadcast %cst_8 : f32 to vector<2x1xf32>
    %19 = arith.divf %17, %18 : vector<2x1xf32>
    %20 = vector.broadcast %10 : vector<2x1xf32> to vector<2x256xf32>
    %21 = arith.subf %6, %20 : vector<2x256xf32>
    %cst_9 = arith.constant 9.99999974E-6 : f32
    %22 = vector.broadcast %cst_9 : f32 to vector<2x1xf32>
    %23 = arith.addf %19, %22 : vector<2x1xf32>
    %24 = math.rsqrt %23 : vector<2x1xf32>
    %25 = vector.broadcast %24 : vector<2x1xf32> to vector<2x256xf32>
    %26 = arith.mulf %21, %25 : vector<2x256xf32>
    %c1 = arith.constant 1 : index
    %c0_10 = arith.constant 0 : index
    %27 = vector.load %arg3[%c1, %c0_10] : memref<8x256xf32, #tpu.memory_space<vmem>>, vector<1x256xf32>
    %28 = vector.broadcast %27 : vector<1x256xf32> to vector<2x256xf32>
    %29 = arith.mulf %26, %28 : vector<2x256xf32>
    %c2 = arith.constant 2 : index
    %c0_11 = arith.constant 0 : index
    %30 = vector.load %arg3[%c2, %c0_11] : memref<8x256xf32, #tpu.memory_space<vmem>>, vector<1x256xf32>
    %31 = vector.broadcast %30 : vector<1x256xf32> to vector<2x256xf32>
    %32 = arith.addf %29, %31 : vector<2x256xf32>
    %cst_12 = arith.constant 0.000000e+00 : f32
    %33 = vector.broadcast %cst_12 : f32 to vector<2x256xf32>
    %34 = arith.maximumf %32, %33 : vector<2x256xf32>
    %35 = arith.truncf %34 : vector<2x256xf32> to vector<2x256xbf16>
    %c0_13 = arith.constant 0 : index
    %c0_14 = arith.constant 0 : index
    %36 = vector.load %arg4[%c0_13, %c0_14] : memref<256x128xbf16, #tpu.memory_space<vmem>>, vector<256x128xbf16>
    %cst_15 = arith.constant dense<0.000000e+00> : vector<2x128xf32>
    %37 = tpu.matmul %35, %36, %cst_15 {dimension_numbers = #tpu.dot_dimension_numbers<[1], [0], [0], [1], [0, 0, 1, 1], [], []>} : vector<2x256xbf16>, vector<256x128xbf16>, vector<2x128xf32> -> vector<2x128xf32>
    %c3 = arith.constant 3 : index
    %c0_16 = arith.constant 0 : index
    %38 = vector.load %arg3[%c3, %c0_16] : memref<8x256xf32, #tpu.memory_space<vmem>>, vector<1x128xf32>
    %39 = vector.broadcast %38 : vector<1x128xf32> to vector<2x128xf32>
    %40 = arith.addf %37, %39 : vector<2x128xf32>
    %41 = arith.truncf %40 : vector<2x128xf32> to vector<2x128xbf16>
    %c0_17 = arith.constant 0 : index
    %c0_18 = arith.constant 0 : index
    %42 = vector.load %arg5[%c0_17, %c0_18] : memref<2x128xbf16, #tpu.memory_space<vmem>>, vector<2x128xbf16>
    tpu.vector_store %arg5[%c0_17, %c0_18], %41 {strides = array<i32>} : memref<2x128xbf16, #tpu.memory_space<vmem>>, vector<2x128xbf16>,
    return
  }
  func.func @transform_0(%arg0: i32) -> (i32, i32) {
    %c0_i32 = arith.constant 0 : i32
    %c0_i32_0 = arith.constant 0 : i32
    return %arg0, %c0_i32 : i32, i32
  }
  func.func @transform_1(%arg0: i32) -> (i32, i32) {
    %c0_i32 = arith.constant 0 : i32
    %c0_i32_0 = arith.constant 0 : i32
    %c0_i32_1 = arith.constant 0 : i32
    return %c0_i32, %c0_i32_0 : i32, i32
  }
  func.func @transform_2(%arg0: i32) -> (i32, i32) {
    %c0_i32 = arith.constant 0 : i32
    %c0_i32_0 = arith.constant 0 : i32
    %c0_i32_1 = arith.constant 0 : i32
    return %c0_i32, %c0_i32_0 : i32, i32
  }
  func.func @transform_3(%arg0: i32) -> (i32, i32) {
    %c0_i32 = arith.constant 0 : i32
    %c0_i32_0 = arith.constant 0 : i32
    %c0_i32_1 = arith.constant 0 : i32
    return %c0_i32, %c0_i32_0 : i32, i32
  }
  func.func @transform_4(%arg0: i32) -> (i32, i32) {
    %c0_i32 = arith.constant 0 : i32
    %c0_i32_0 = arith.constant 0 : i32
    return %arg0, %c0_i32 : i32, i32
  }
}

</mosaic_0001>

<bundles_post_ra>
// kernel: sentiment_head.1
= control target key start
LH: loop header
LB: loop body
LE: loop exit
PB: predicated region body
PF: predicated region fallthrough
CT: control target
= control target key end

     0   :  { %9 = vsyncpa [#allocation3], 0  ;;  %s1545_s0 = inlined_call_operand.vmem [shape: f32[2,6144], index: 0, kind: input, shape index: {}]   ;;  %s1546_s1 = inlined_call_operand.hbm [shape: bf16[768,256], index: 1, kind: input, shape index: {}]   ;;  %s1547_s2 = inlined_call_operand.vmem [shape: f32[8,256], index: 2, kind: input, shape index: {}]   ;;  %s1548_s3 = inlined_call_operand.vmem [shape: bf16[256,128], index: 3, kind: input, shape index: {}]   ;;  %s1549_s4 = inlined_call_operand.hbm [shape: bf16[2,128], index: 4, kind: output, shape index: {}]  }
   0x1   :  { %10 = vsyncpa [#allocation4], 0  ;;  %s1388_s15 = smov [#allocation2]   ;;  %s1340_s19 = scalar_lea.hbm %s1546_s1, 12288 }
   0x2   :  { %s18_s16 = sshll.u32 %s1388_s15, 4  ;;  %p1341_p0 = scmp.ne.s32.totalorder %s1546_s1, %s1340_s19  ;;  %s19_s16 = int_to_ptr.vmem [resolvable:$true] %s18_s16 }
   0x3   :  { %p1344_p1 = scmp.lt.u32.totalorder %s1340_s19, %s1546_s1 }
   0x5   :  { %p1346_p2 = pnand %p1344_p1, %p1341_p0 }
   0x7   :  { %1349 = shalt.err (!%p1346_p2)
}
   0x8   :  { %s1350_s24 = scalar_lea.vmem %s19_s16, 12288  ;;  %p1355_p4 = scmp.lt.s32.totalorder %s19_s16, %s19_s16 }
   0x9   :  { %p1351_p3 = scmp.ne.s32.totalorder %s19_s16, %s1350_s24  ;;  %p1356_p5 = scmp.lt.s32.totalorder %s1350_s24, %s1350_s24 }
   0xb   :  { %p1357_p6 = por %p1356_p5, %p1355_p4 }
   0xd   :  { %p1358_p7 = pnand %p1357_p6, %p1351_p3 }
   0xf   :  { %1361 = shalt.err (!%p1358_p7)
}
  0x10   :  { %s1389_s25 = smov 128   ;;  %s1390_s26 = smov 8  }
  0x11   :  { %24 = dma.hbm_to_vmem [thread:$0]  %s1546_s1, 12288, %s19_s16, [#allocation3], %s1389_s25, %s1389_s25, %s1390_s26  }
  0x12   :  { %1384 = dma.done.wait [#allocation3], 12288  }
  0x13   :  { %1385 = vsyncadd [#allocation3], 4294955008  ;;  %v1177_v0 = vld [vmem:[#allocation2 + $0x104] ss:$8 sps:$4 sm:$0xff]   ;;  %v1179_v1 = vld [vmem:[#allocation2 + $0x100] ss:$8 sps:$4 sm:$0xff]   ;;  %v41_v12 = vlaneseq }
  0x14   :  { %703 = vmatprep.subr.bf16.mxu0 %v1177_v0  ;;  %v1180_v2 = vld [vmem:[#allocation2 + $0x114] ss:$8 sps:$4 sm:$0xff]   ;;  %v1182_v3 = vld [vmem:[#allocation2 + $0x110] ss:$8 sps:$4 sm:$0xff]   ;;  %v1183_v4 = vld [vmem:[#allocation2 + $0x124] ss:$8 sps:$4 sm:$0xff]  }
  0x15   :  { %704 = vmatpush1.bf16.msra.mxu0 %v1179_v1  ;;  %v1185_v5 = vld [vmem:[#allocation2 + $0x120] ss:$8 sps:$4 sm:$0xff]   ;;  %v1186_v6 = vld [vmem:[#allocation2 + $0x134] ss:$8 sps:$4 sm:$0xff]   ;;  %v1188_v7 = vld [vmem:[#allocation2 + $0x130] ss:$8 sps:$4 sm:$0xff]  }
  0x16   :  { %705 = vmatprep.subr.bf16.mxu0 %v1180_v2  ;;  %v1189_v8 = vld [vmem:[#allocation2 + $0x144] ss:$8 sps:$4 sm:$0xff]   ;;  %v1191_v9 = vld [vmem:[#allocation2 + $0x140] ss:$8 sps:$4 sm:$0xff]   ;;  %v1391_v10 = vmov 1983009808  }
  0x17   :  { %v39_v11 = vunpack.c.l.s4 %v1391_v10  ;;  %v1192_v13 = vld [vmem:[#allocation2 + $0x154] ss:$8 sps:$4 sm:$0xff]   ;;  %v1194_v14 = vld [vmem:[#allocation2 + $0x150] ss:$8 sps:$4 sm:$0xff]   ;;  %v1195_v15 = vld [vmem:[#allocation2 + $0x164] ss:$8 sps:$4 sm:$0xff]  }
  0x18   :  { %v1430_v17 = vshrl.u32 %v41_v12, 7  ;;  %v1222_v18 = vld [vmem:[#allocation2 + $0x4] ss:$8 sps:$4 sm:$0xff]   ;;  %v1224_v19 = vld [vmem:[#allocation2] ss:$8 sps:$4 sm:$0xff]   ;;  %vm785_vm0 = vcmask 1041408  }
  0x19   :  { %706 = vmatpush1.bf16.msra.mxu0 %v1182_v3  ;;  %v40_v16 = vunpack.c.0.s8 %v39_v11  ;;  %v1197_v20 = vld [vmem:[#allocation2 + $0x160] ss:$8 sps:$4 sm:$0xff]   ;;  %v1198_v21 = vld [vmem:[#allocation2 + $0x174] ss:$8 sps:$4 sm:$0xff]   ;;  %662 = vmatprep.subr.bf16.mxu1 %v1222_v18  ;;  %v1230_v23 = vld [vmem:[#allocation2 + $0x10] ss:$8 sps:$4 sm:$0xff]  }
  0x1a   :  { %707 = vmatprep.subr.bf16.mxu0 %v1183_v4  ;;  %663 = vmatpush1.bf16.msra.mxu1 %v1224_v19  ;;  %v1228_v22 = vld [vmem:[#allocation2 + $0x14] ss:$8 sps:$4 sm:$0xff]   ;;  %v33_v25 = vld [vmem:[%s1545_s0] sm:$0xff]  ;;  %v1200_v28 = vld [vmem:[#allocation2 + $0x170] ss:$8 sps:$4 sm:$0xff]   ;;  %s1392_s16 = smov [#allocation5]  }
  0x1b   :  { %v43_v24 = vsub.s32 %v40_v16, %v1430_v17  ;;  %664 = vmatprep.subr.bf16.mxu1 %v1228_v22  ;;  %v37_v26 = vcombine.high %v33_v25, %v33_v25  ;;  %v1235_v29 = vld [vmem:[#allocation2 + $0x24] ss:$8 sps:$4 sm:$0xff]   ;;  %v1237_v31 = vld [vmem:[#allocation2 + $0x20] ss:$8 sps:$4 sm:$0xff]   ;;  %v1241_v35 = vld [vmem:[#allocation2 + $0x34] ss:$8 sps:$4 sm:$0xff]  }
  0x1c   :  { %v1201_v33 = vld [vmem:[#allocation2 + $0x184] ss:$8 sps:$4 sm:$0xff]   ;;  %v1203_v37 = vld [vmem:[#allocation2 + $0x180] ss:$8 sps:$4 sm:$0xff]   ;;  %v1204_v38 = vld [vmem:[#allocation2 + $0x194] ss:$8 sps:$4 sm:$0xff]  }
  0x1d   :  { %708 = vmatpush1.bf16.msra.mxu0 %v1185_v5  ;;  %v1436_v27 = vrot.slane %v33_v25, %v43_v24  ;;  %v1438_v30 = vrot.slane %v37_v26, %v43_v24  ;;  %v1243_v40 = vld [vmem:[#allocation2 + $0x30] ss:$8 sps:$4 sm:$0xff]   ;;  %v1247_v41 = vld [vmem:[#allocation2 + $0x44] ss:$8 sps:$4 sm:$0xff]   ;;  %v1249_v44 = vld [vmem:[#allocation2 + $0x40] ss:$8 sps:$4 sm:$0xff]  }
  0x1e   :  { %709 = vmatprep.subr.bf16.mxu0 %v1186_v6  ;;  %665 = vmatpush1.bf16.msra.mxu1 %v1230_v23  ;;  %v1206_v42 = vld [vmem:[#allocation2 + $0x190] ss:$8 sps:$4 sm:$0xff]   ;;  %v1207_v43 = vld [vmem:[#allocation2 + $0x1a4] ss:$8 sps:$4 sm:$0xff]   ;;  %v1253_v45 = vld [vmem:[#allocation2 + $0x54] ss:$8 sps:$4 sm:$0xff]  }
  0x1f   :  { %v52_v32 = vcombine.high %v1436_v27, %v1436_v27  ;;  %666 = vmatprep.subr.bf16.mxu1 %v1235_v29  ;;  %v53_v34 = vcombine.high %v1438_v30, %v1438_v30  ;;  %v1209_v46 = vld [vmem:[#allocation2 + $0x1a0] ss:$8 sps:$4 sm:$0xff]   ;;  %v1210_v47 = vld [vmem:[#allocation2 + $0x1b4] ss:$8 sps:$4 sm:$0xff]   ;;  %v1255_v48 = vld [vmem:[#allocation2 + $0x50] ss:$8 sps:$4 sm:$0xff]  }
  0x20   :  { %v1259_v49 = vld [vmem:[#allocation2 + $0x64] ss:$8 sps:$4 sm:$0xff]   ;;  %v1212_v50 = vld [vmem:[#allocation2 + $0x1b0] ss:$8 sps:$4 sm:$0xff]   ;;  %v1261_v52 = vld [vmem:[#allocation2 + $0x60] ss:$8 sps:$4 sm:$0xff]  }
  0x21   :  { %710 = vmatpush1.bf16.msra.mxu0 %v1188_v7  ;;  %v69_v36 = vpack.c.bf16 %v52_v32, %v52_v32  ;;  %v71_v39 = vpack.c.bf16 %v53_v34, %v53_v34  ;;  %v1213_v51 = vld [vmem:[#allocation2 + $0x1c4] ss:$8 sps:$4 sm:$0xff]   ;;  %v1265_v53 = vld [vmem:[#allocation2 + $0x74] ss:$8 sps:$4 sm:$0xff]   ;;  %v1215_v54 = vld [vmem:[#allocation2 + $0x1c0] ss:$8 sps:$4 sm:$0xff]   ;;  %v70_v7 = vpack.c.bf16 %v1438_v30, %v1438_v30 }
  0x22   :  { %711 = vmatprep.subr.bf16.mxu0 %v1189_v8  ;;  %667 = vmatpush1.bf16.msra.mxu1 %v1237_v31  ;;  %v1216_v55 = vld [vmem:[#allocation2 + $0x1d4] ss:$8 sps:$4 sm:$0xff]   ;;  %v1267_v56 = vld [vmem:[#allocation2 + $0x70] ss:$8 sps:$4 sm:$0xff]   ;;  %v1271_v57 = vld [vmem:[#allocation2 + $0x84] ss:$8 sps:$4 sm:$0xff]   ;;  %v68_v31 = vpack.c.bf16 %v1436_v27, %v1436_v27 }
  0x23   :  { %668 = vmatprep.subr.bf16.mxu1 %v1241_v35  ;;  %735 = vmatprep.mubr.bf16.mxu0 %v71_v39  ;;  %v1218_v58 = vld [vmem:[#allocation2 + $0x1d0] ss:$8 sps:$4 sm:$0xff]   ;;  %v1219_v59 = vld [vmem:[#allocation2 + $0x1e4] ss:$8 sps:$4 sm:$0xff]   ;;  %v1273_v60 = vld [vmem:[#allocation2 + $0x80] ss:$8 sps:$4 sm:$0xff]  }
  0x24   :  { %694 = vmatprep.mubr.bf16.mxu1 %v69_v36  ;;  %v1277_v61 = vld [vmem:[#allocation2 + $0x94] ss:$8 sps:$4 sm:$0xff]   ;;  %v1221_v62 = vld [vmem:[#allocation2 + $0x1e0] ss:$8 sps:$4 sm:$0xff]   ;;  %v1279_v0 = vld [vmem:[#allocation2 + $0x90] ss:$8 sps:$4 sm:$0xff]  }
  0x25   :  { %712 = vmatpush1.bf16.msra.mxu0 %v1191_v9  ;;  %v1225_v63 = vld [vmem:[#allocation2 + $0x1f4] ss:$8 sps:$4 sm:$0xff]   ;;  %v1283_v1 = vld [vmem:[#allocation2 + $0xa4] ss:$8 sps:$4 sm:$0xff]   ;;  %v1227_v2 = vld [vmem:[#allocation2 + $0x1f0] ss:$8 sps:$4 sm:$0xff]  }
  0x26   :  { %713 = vmatprep.subr.bf16.mxu0 %v1192_v13  ;;  %669 = vmatpush1.bf16.msra.mxu1 %v1243_v40  ;;  %v1234_v3 = vld [vmem:[#allocation2 + $0x204] ss:$8 sps:$4 sm:$0xff]   ;;  %v1285_v4 = vld [vmem:[#allocation2 + $0xa0] ss:$8 sps:$4 sm:$0xff]   ;;  %v1289_v5 = vld [vmem:[#allocation2 + $0xb4] ss:$8 sps:$4 sm:$0xff]  }
  0x27   :  { %670 = vmatprep.subr.bf16.mxu1 %v1247_v41  ;;  %v1232_v6 = vld [vmem:[#allocation2 + $0x200] ss:$8 sps:$4 sm:$0xff]   ;;  %v1240_v8 = vld [vmem:[#allocation2 + $0x214] ss:$8 sps:$4 sm:$0xff]   ;;  %v1291_v9 = vld [vmem:[#allocation2 + $0xb0] ss:$8 sps:$4 sm:$0xff]  }
  0x28   :  { %v1295_v10 = vld [vmem:[#allocation2 + $0xc4] ss:$8 sps:$4 sm:$0xff]   ;;  %v1449_v11 = vld.sshfl [vmem:[%s1545_s0 + $0x8] sm:$0x33 pattern:$0x76325410] }
  0x29   :  { %714 = vmatpush1.bf16.msra.mxu0 %v1194_v14  ;;  %v1238_v12 = vld [vmem:[#allocation2 + $0x210] ss:$8 sps:$4 sm:$0xff]   ;;  %v1297_v13 = vld [vmem:[#allocation2 + $0xc0] ss:$8 sps:$4 sm:$0xff]   ;;  %v61_v14 = vcombine.high %v1449_v11, %v1449_v11  ;;  %v1301_v16 = vld [vmem:[#allocation2 + $0xd4] ss:$8 sps:$4 sm:$0xff]  }
  0x2a   :  { %715 = vmatprep.subr.bf16.mxu0 %v1195_v15  ;;  %671 = vmatpush1.bf16.msra.mxu1 %v1249_v44  ;;  %v1246_v15 = vld [vmem:[#allocation2 + $0x224] ss:$8 sps:$4 sm:$0xff]   ;;  %v1244_v19 = vld [vmem:[#allocation2 + $0x220] ss:$8 sps:$4 sm:$0xff]   ;;  %v1250_v23 = vld [vmem:[#allocation2 + $0x230] ss:$8 sps:$4 sm:$0xff]  }
  0x2b   :  { %672 = vmatprep.subr.bf16.mxu1 %v1253_v45  ;;  %v73_v18 = vpack.c.bf16 %v61_v14, %v61_v14  ;;  %v1307_v22 = vld [vmem:[#allocation2 + $0xe4] ss:$8 sps:$4 sm:$0xff]   ;;  %v1309_v24 = vld [vmem:[#allocation2 + $0xe0] ss:$8 sps:$4 sm:$0xff]   ;;  %v1313_v26 = vld [vmem:[#allocation2 + $0xf4] ss:$8 sps:$4 sm:$0xff]  }
  0x2c   :  { %v1258_v25 = vld [vmem:[#allocation2 + $0x244] ss:$8 sps:$4 sm:$0xff]   ;;  %v1315_v29 = vld [vmem:[#allocation2 + $0xf0] ss:$8 sps:$4 sm:$0xff]   ;;  %v1264_v30 = vld [vmem:[#allocation2 + $0x254] ss:$8 sps:$4 sm:$0xff]  }
  0x2d   :  { %716 = vmatpush1.bf16.msra.mxu0 %v1197_v20  ;;  %v1303_v20 = vld [vmem:[#allocation2 + $0xd0] ss:$8 sps:$4 sm:$0xff]   ;;  %v1268_v34 = vld [vmem:[#allocation2 + $0x260] ss:$8 sps:$4 sm:$0xff]   ;;  %v1276_v35 = vld [vmem:[#allocation2 + $0x274] ss:$8 sps:$4 sm:$0xff]  }
  0x2e   :  { %717 = vmatprep.subr.bf16.mxu0 %v1198_v21  ;;  %673 = vmatpush1.bf16.msra.mxu1 %v1255_v48  ;;  %v1252_v21 = vld [vmem:[#allocation2 + $0x234] ss:$8 sps:$4 sm:$0xff]   ;;  %v1262_v32 = vld [vmem:[#allocation2 + $0x250] ss:$8 sps:$4 sm:$0xff]   ;;  %v1294_v40 = vld [vmem:[#allocation2 + $0x2a4] ss:$8 sps:$4 sm:$0xff]  }
  0x2f   :  { %674 = vmatprep.subr.bf16.mxu1 %v1259_v49  ;;  %v1274_v36 = vld [vmem:[#allocation2 + $0x270] ss:$8 sps:$4 sm:$0xff]   ;;  %v1288_v39 = vld [vmem:[#allocation2 + $0x294] ss:$8 sps:$4 sm:$0xff]   ;;  %v1292_v41 = vld [vmem:[#allocation2 + $0x2a0] ss:$8 sps:$4 sm:$0xff]  }
  0x30   :  { %v1286_v27 = vld [vmem:[#allocation2 + $0x290] ss:$8 sps:$4 sm:$0xff]   ;;  %v1306_v44 = vld [vmem:[#allocation2 + $0x2c4] ss:$8 sps:$4 sm:$0xff]   ;;  %v1304_v45 = vld [vmem:[#allocation2 + $0x2c0] ss:$8 sps:$4 sm:$0xff]  }
  0x31   :  { %718 = vmatpush1.bf16.msra.mxu0 %v1200_v28  ;;  %v1256_v28 = vld [vmem:[#allocation2 + $0x240] ss:$8 sps:$4 sm:$0xff]   ;;  %v1318_v48 = vld [vmem:[#allocation2 + $0x2e4] ss:$8 sps:$4 sm:$0xff]   ;;  %s1018_s17 = sshll.u32 %s1392_s16, 4  ;;  %s1019_s17 = int_to_ptr.vmem [resolvable:$true] %s1018_s17 }
  0x32   :  { %719 = vmatprep.subr.bf16.mxu0 %v1201_v33  ;;  %675 = vmatpush1.bf16.msra.mxu1 %v1261_v52  ;;  %v1270_v33 = vld [vmem:[#allocation2 + $0x264] ss:$8 sps:$4 sm:$0xff]   ;;  %v1316_v49 = vld [vmem:[#allocation2 + $0x2e0] ss:$8 sps:$4 sm:$0xff]   ;;  %v72_v52 = vpack.c.bf16 %v1449_v11, %v1449_v11  ;;  %s1362_s18 = scalar_lea.vmem %s1019_s17, 16  ;;  %s1366_s19 = scalar_lea.vmem %s1019_s17, 32 }
  0x33   :  { %676 = vmatprep.subr.bf16.mxu1 %v1265_v53  ;;  %v1325_v11 = vld [vmem:[%s1548_s3 + $0x8] sm:$0xff]   ;;  %p1363_p8 = scmp.ne.s32.totalorder %s1019_s17, %s1362_s18  ;;  %p1367_p9 = scmp.lt.s32.totalorder %s1019_s17, %s1019_s17 }
  0x34   :  { %p1368_p10 = scmp.lt.s32.totalorder %s1366_s19, %s1362_s18 }
  0x35   :  { %720 = vmatpush1.bf16.msra.mxu0 %v1203_v37  ;;  %v1282_v37 = vld [vmem:[#allocation2 + $0x284] ss:$8 sps:$4 sm:$0xff]  }
  0x36   :  { %721 = vmatprep.subr.bf16.mxu0 %v1204_v38  ;;  %677 = vmatpush1.bf16.msra.mxu1 %v1267_v56  ;;  %v1280_v38 = vld [vmem:[#allocation2 + $0x280] ss:$8 sps:$4 sm:$0xff]   ;;  %p1369_p11 = por %p1368_p10, %p1367_p9 }
  0x37   :  { %678 = vmatprep.subr.bf16.mxu1 %v1271_v57  ;;  %v1458_v57 = vsub.s32 0, %v1430_v17 }
  0x38   :  { %p1370_p12 = pnand %p1369_p11, %p1363_p8 }
  0x39   :  { %722 = vmatpush1.bf16.msra.mxu0 %v1206_v42  ;;  %v1300_v42 = vld [vmem:[#allocation2 + $0x2b4] ss:$8 sps:$4 sm:$0xff]  }
  0x3a   :  { %723 = vmatprep.subr.bf16.mxu0 %v1207_v43  ;;  %679 = vmatpush1.bf16.msra.mxu1 %v1273_v60  ;;  %v1298_v43 = vld [vmem:[#allocation2 + $0x2b0] ss:$8 sps:$4 sm:$0xff]  }
  0x3b   :  { %680 = vmatprep.subr.bf16.mxu1 %v1277_v61 }
  0x3d   :  { %724 = vmatpush1.bf16.msra.mxu0 %v1209_v46  ;;  %v1312_v46 = vld [vmem:[#allocation2 + $0x2d4] ss:$8 sps:$4 sm:$0xff]  }
  0x3e   :  { %725 = vmatprep.subr.bf16.mxu0 %v1210_v47  ;;  %681 = vmatpush1.bf16.msra.mxu1 %v1279_v0  ;;  %v1310_v47 = vld [vmem:[#allocation2 + $0x2d0] ss:$8 sps:$4 sm:$0xff]  }
  0x3f   :  { %682 = vmatprep.subr.bf16.mxu1 %v1283_v1 }
  0x41   :  { %726 = vmatpush1.bf16.msra.mxu0 %v1212_v50  ;;  %v1321_v50 = vld [vmem:[#allocation2 + $0x2f4] ss:$8 sps:$4 sm:$0xff]  }
  0x42   :  { %727 = vmatprep.subr.bf16.mxu0 %v1213_v51  ;;  %683 = vmatpush1.bf16.msra.mxu1 %v1285_v4  ;;  %v1319_v51 = vld [vmem:[#allocation2 + $0x2f0] ss:$8 sps:$4 sm:$0xff]  }
  0x43   :  { %684 = vmatprep.subr.bf16.mxu1 %v1289_v5 }
  0x45   :  { %728 = vmatpush1.bf16.msra.mxu0 %v1215_v54 }
  0x46   :  { %729 = vmatprep.subr.bf16.mxu0 %v1216_v55  ;;  %685 = vmatpush1.bf16.msra.mxu1 %v1291_v9  ;;  %v1323_v9 = vld [vmem:[%s1548_s3] sm:$0xff]  }
  0x47   :  { %686 = vmatprep.subr.bf16.mxu1 %v1295_v10  ;;  %v1324_v10 = vld [vmem:[%s1548_s3 + $0x48] sm:$0xff]  }
  0x49   :  { %730 = vmatpush1.bf16.msra.mxu0 %v1218_v58  ;;  %v170_v58 = vld [vmem:[%s1547_s2] ss:$8 sm:$0x3] }
  0x4a   :  { %731 = vmatprep.subr.bf16.mxu0 %v1219_v59  ;;  %687 = vmatpush1.bf16.msra.mxu1 %v1297_v13  ;;  %v1464_v59 = vsub.s32 1, %v1430_v17  ;;  %v175_v60 = vrot.slane %v170_v58, %v1458_v57  ;;  %v1322_v17 = vld [vmem:[%s1548_s3 + $0x40] sm:$0xff]  }
  0x4b   :  { %688 = vmatprep.subr.bf16.mxu1 %v1301_v16 }
  0x4c   :  { %v179_v61 = vrot.slane %v170_v58, %v1464_v59 }
  0x4d   :  { %732 = vmatpush1.bf16.msra.mxu0 %v1221_v62 }
  0x4e   :  { %733 = vmatprep.subr.bf16.mxu0 %v1225_v63  ;;  %689 = vmatpush1.bf16.msra.mxu1 %v1303_v20 }
  0x4f   :  { %690 = vmatprep.subr.bf16.mxu1 %v1307_v22  ;;  %v1326_v22 = vld [vmem:[%s1548_s3 + $0x50] sm:$0xff]  }
  0x51   :  { %734 = vmatpush1.bf16.msra.mxu0 %v1227_v2 }
  0x52   :  { %744 = vmatprep.subr.bf16.mxu0 %v1234_v3  ;;  %691 = vmatpush1.bf16.msra.mxu1 %v1309_v24  ;;  %v1328_v24 = vld [vmem:[%s1548_s3 + $0x58] sm:$0xff]  }
  0x53   :  { %692 = vmatprep.subr.bf16.mxu1 %v1313_v26  ;;  %v1330_v26 = vld [vmem:[%s1548_s3 + $0x60] sm:$0xff]  }
  0x54   :  { %736 = vmatmul.mubr.bf16.vlgmr.msra.gmra.mrb[0].mxu0 %v70_v7 }
  0x55   :  { %745 = vmatpush1.bf16.msra.mxu0 %v1232_v6  ;;  %776 = vmatprep.mubr.bf16.mxu0 %v73_v18 }
  0x56   :  { %746 = vmatprep.subr.bf16.mxu0 %v1240_v8  ;;  %693 = vmatpush1.bf16.msra.mxu1 %v1315_v29  ;;  %v1332_v29 = vld [vmem:[%s1548_s3 + $0x68] sm:$0xff]  }
  0x57   :  { %1142 = vmatprep.subr.bf16.mxu1 %v1322_v17 }
  0x59   :  { %747 = vmatpush1.bf16.msra.mxu0 %v1238_v12  ;;  %695 = vmatmul.mubr.bf16.vlgmr.msra.gmra.mrb[0].mxu1 %v68_v31  ;;  %v1334_v31 = vld [vmem:[%s1548_s3 + $0x70] sm:$0xff]  }
  0x5a   :  { %748 = vmatprep.subr.bf16.mxu0 %v1246_v15  ;;  %1143 = vmatpush3.bf16.msra.mxu1 %v1323_v9 }
  0x5b   :  { %1144 = vmatprep.subr.bf16.mxu1 %v1324_v10 }
  0x5d   :  { %749 = vmatpush1.bf16.msra.mxu0 %v1244_v19 }
  0x5e   :  { %750 = vmatprep.subr.bf16.mxu0 %v1252_v21  ;;  %1145 = vmatpush3.bf16.msra.mxu1 %v1325_v11 }
  0x5f   :  { %1146 = vmatprep.subr.bf16.mxu1 %v1326_v22 }
  0x61   :  { %751 = vmatpush1.bf16.msra.mxu0 %v1250_v23  ;;  %v1327_v23 = vld [vmem:[%s1548_s3 + $0x10] sm:$0xff]  }
  0x62   :  { %752 = vmatprep.subr.bf16.mxu0 %v1258_v25  ;;  %1147 = vmatpush3.bf16.msra.mxu1 %v1327_v23  ;;  %v1329_v25 = vld [vmem:[%s1548_s3 + $0x18] sm:$0xff]  }
  0x63   :  { %1148 = vmatprep.subr.bf16.mxu1 %v1328_v24 }
  0x65   :  { %753 = vmatpush1.bf16.msra.mxu0 %v1256_v28  ;;  %v1331_v28 = vld [vmem:[%s1548_s3 + $0x20] sm:$0xff]  }
  0x66   :  { %754 = vmatprep.subr.bf16.mxu0 %v1264_v30  ;;  %1149 = vmatpush3.bf16.msra.mxu1 %v1329_v25  ;;  %v1333_v30 = vld [vmem:[%s1548_s3 + $0x28] sm:$0xff]  }
  0x67   :  { %1150 = vmatprep.subr.bf16.mxu1 %v1330_v26 }
  0x69   :  { %755 = vmatpush1.bf16.msra.mxu0 %v1262_v32  ;;  %v1335_v32 = vld [vmem:[%s1548_s3 + $0x30] sm:$0xff]  }
  0x6a   :  { %756 = vmatprep.subr.bf16.mxu0 %v1270_v33  ;;  %1151 = vmatpush3.bf16.msra.mxu1 %v1331_v28  ;;  %v1336_v33 = vld [vmem:[%s1548_s3 + $0x78] sm:$0xff]  }
  0x6b   :  { %1152 = vmatprep.subr.bf16.mxu1 %v1332_v29 }
  0x6d   :  { %757 = vmatpush1.bf16.msra.mxu0 %v1268_v34  ;;  %v1337_v34 = vld [vmem:[%s1548_s3 + $0x38] sm:$0xff]  }
  0x6e   :  { %758 = vmatprep.subr.bf16.mxu0 %v1276_v35  ;;  %1153 = vmatpush3.bf16.msra.mxu1 %v1333_v30 }
  0x6f   :  { %1154 = vmatprep.subr.bf16.mxu1 %v1334_v31 }
  0x71   :  { %759 = vmatpush1.bf16.msra.mxu0 %v1274_v36 }
  0x72   :  { %760 = vmatprep.subr.bf16.mxu0 %v1282_v37  ;;  %1155 = vmatpush3.bf16.msra.mxu1 %v1335_v32 }
  0x73   :  { %1156 = vmatprep.subr.bf16.mxu1 %v1336_v33 }
  0x75   :  { %761 = vmatpush1.bf16.msra.mxu0 %v1280_v38  ;;  %v1124_v38 = vld [vmem:[%s1547_s2 + $0x1] ss:$8 sm:$0x3] }
  0x76   :  { %762 = vmatprep.subr.bf16.mxu0 %v1288_v39  ;;  %1157 = vmatpush3.bf16.msra.mxu1 %v1337_v34  ;;  %v1125_v39 = vld [vmem:[%s1547_s2 + $0x2] ss:$8 sm:$0x3] }
  0x79   :  { %763 = vmatpush1.bf16.msra.mxu0 %v1286_v27  ;;  %v813_v27 = vrot.slane %v1124_v38, %v1458_v57 }
  0x7a   :  { %764 = vmatprep.subr.bf16.mxu0 %v1294_v40  ;;  %v817_v40 = vrot.slane %v1124_v38, %v1464_v59 }
  0x7d   :  { %765 = vmatpush1.bf16.msra.mxu0 %v1292_v41 }
  0x7e   :  { %766 = vmatprep.subr.bf16.mxu0 %v1300_v42 }
  0x81   :  { %767 = vmatpush1.bf16.msra.mxu0 %v1298_v43 }
  0x82   :  { %768 = vmatprep.subr.bf16.mxu0 %v1306_v44  ;;  %v828_v44 = vrot.slane %v1125_v39, %v1458_v57 }
  0x85   :  { %769 = vmatpush1.bf16.msra.mxu0 %v1304_v45  ;;  %v832_v45 = vrot.slane %v1125_v39, %v1464_v59 }
  0x86   :  { %770 = vmatprep.subr.bf16.mxu0 %v1312_v46 }
  0x89   :  { %771 = vmatpush1.bf16.msra.mxu0 %v1310_v47 }
  0x8a   :  { %772 = vmatprep.subr.bf16.mxu0 %v1318_v48 }
  0x8d   :  { %773 = vmatpush1.bf16.msra.mxu0 %v1316_v49 }
  0x8e   :  { %774 = vmatprep.subr.bf16.mxu0 %v1321_v50 }
  0x91   :  { %775 = vmatpush1.bf16.msra.mxu0 %v1319_v51 }
  0x94   :  { %777 = vmatmul.mubr.bf16.vlgmr.msra.gmra.mrb[0].mxu0 %v72_v52 }
 0x12c   :  { %v696_v53 = vpop.f32.mrb[0].mxu1 }
 0x12d   :  { %v698_v54 = vpop.f32.mrb[1].mxu1  ;;  %v697_v62 = vadd.f32 %v696_v53, %v175_v60 }
 0x12e   :  { %v700_v55 = vpop.f32.mrb[2].mxu1  ;;  %v699_v63 = vadd.f32 %v698_v54, %v179_v61 }
 0x12f   :  { %v701_v56 = vpop.f32.mrb[3].mxu1  ;;  %v873_v55 = vld [vmem:[%s1547_s2 + $0x3] ss:$0 sm:$0xff] }
 0x167   :  { %v778_v0 = vpop.f32.mrb[0].mxu0 }
 0x168   :  { %v1165_v1 = vadd.f32 %v778_v0, %v697_v62  ;;  %v780_v2 = vpop.f32.mrb[1].mxu0 }
 0x169   :  { %v1167_v3 = vadd.f32 %v780_v2, %v699_v63  ;;  %v782_v4 = vpop.f32.mrb[2].mxu0 }
 0x16a   :  { %v783_v5 = vpop.f32.mrb[3].mxu0  ;;  %v786_v6 = vsel %vm785_vm0, %v1165_v1, 0.0 }
 0x16b   :  { %v787_v7 = vsel %vm785_vm0, %v1167_v3, 0.0 }
 0x16c   :  { %v788_v8 = vadd.f32 %v787_v7, %v786_v6 }
 0x16e   :  { %789 = vadd.xlane.f32.xlu0 %v788_v8 }
 0x1fb   :  { %v790_v12 = vpop.xlane.xlu0 %789 }
 0x1fc   :  { %v792_v13 = vmul.f32 0.00390625, %v790_v12 }
 0x1fe   :  { %v793_v14 = vsub.f32 %v1165_v1, %v792_v13  ;;  %v794_v15 = vsub.f32 %v1167_v3, %v792_v13 }
 0x200   :  { %v795_v16 = vmul.f32 %v793_v14, %v793_v14  ;;  %v796_v18 = vmul.f32 %v794_v15, %v794_v15 }
 0x202   :  { %v797_v19 = vsel %vm785_vm0, %v795_v16, 0.0  ;;  %v798_v20 = vsel %vm785_vm0, %v796_v18, 0.0 }
 0x203   :  { %v799_v21 = vadd.f32 %v798_v20, %v797_v19 }
 0x205   :  { %800 = vadd.xlane.f32.xlu0 %v799_v21 }
 0x292   :  { %v801_v35 = vpop.xlane.xlu0 %800 }
 0x293   :  { %v802_v36 = vmul.f32 0.00390625, %v801_v35 }
 0x295   :  { %v803_v37 = vadd.f32 1e-05, %v802_v36 }
 0x297   :  { %1338 = vrsqrt.f32 %v803_v37 }
 0x2a1   :  { %v1339_v41 = vpop.eup %1338 }
 0x2a2   :  { %v805_v42 = vmul.f32 %v1339_v41, %v793_v14  ;;  %v806_v43 = vmul.f32 %v1339_v41, %v794_v15 }
 0x2a4   :  { %v821_v46 = vmul.f32 %v817_v40, %v806_v43  ;;  %v820_v47 = vmul.f32 %v813_v27, %v805_v42 }
 0x2a6   :  { %v836_v48 = vadd.f32 %v832_v45, %v821_v46  ;;  %v835_v49 = vadd.f32 %v828_v44, %v820_v47 }
 0x2a8   :  { %v838_v50 = vmax.f32 %v836_v48, 0.0  ;;  %v837_v51 = vmax.f32 %v835_v49, 0.0 }
 0x2aa   :  { %v840_v52 = vpack.c.bf16 %v838_v50, %v838_v50  ;;  %v839_v53 = vpack.c.bf16 %v837_v51, %v837_v51 }
 0x2ac   :  { %1002 = vmatprep.mubr.bf16.mxu1 %v840_v52 }
 0x2ad   :  { %1003 = vmatmul.mubr.bf16.vlgmr.msra.gmra.mrb[4].mxu1 %v839_v53 }
 0x380   :  { %v1158_v54 = vpop.f32.mrb[4].mxu1 }
 0x381   :  { %v1159_v56 = vpop.f32.mrb[5].mxu1 }
 0x382   :  { %v1160_v58 = vadd.f32 %v1159_v56, %v1158_v54  ;;  %v1161_v57 = vpop.f32.mrb[6].mxu1 }
 0x383   :  { %v1162_v60 = vpop.f32.mrb[7].mxu1 }
 0x384   :  { %v1005_v59 = vadd.f32 %v1160_v58, %v873_v55 }
 0x386   :  { %v1010_v61 = vpack.c.bf16 %v1005_v59, %v1005_v59 }
 0x388   :  { %1011 = vst [vmem:[#allocation5] sm:$0x1] %v1010_v61 }
 0x389   :  { %1373 = shalt.err (!%p1370_p12)
}
 0x38a   :  { %s1374_s21 = scalar_lea.hbm %s1549_s4, 16 }
 0x38b   :  { %p1375_p13 = scmp.ne.s32.totalorder %s1549_s4, %s1374_s21  ;;  %p1378_p0 = scmp.lt.u32.totalorder %s1374_s21, %s1549_s4 }
 0x38d   :  { %p1380_p1 = pnand %p1378_p0, %p1375_p13 }
 0x38f   :  { %1383 = shalt.err (!%p1380_p1)
}
 0x390   :  { %1021 = dma.vmem_to_hbm [thread:$0]  %s1019_s17, 16, %s1549_s4, [#allocation4]  }
 0x391   :  { %1386 = dma.done.wait [#allocation4], 16  }
 0x392   :  { %1387 = vsyncadd [#allocation4], 4294967280 }
 0x393   :  { %1025 = vsyncpa [#allocation3], 1 }
 0x394   :  { %1026 = vsyncpa [#allocation4], 1 }

</bundles_post_ra>
